<compile_context>
chip_gen: v7x
topology: tpu7x:2x2x1
jax: 0.10.0
libtpu: 0.0.40
codegen_flags: <defaults>
</compile_context>

<pallas_src>
import jax
import jax.numpy as jnp
from jax.experimental import pallas as pl
from jax.experimental.pallas import tpu as pltpu


def _fusion_kernel(xr_ref, w_ref, b_ref, o_ref):
    # xr_ref : (1, Hp, Wp*Cin)    whole padded sample, lane-dense last dim
    # w_ref  : (7, Wp*Cin, W*Cout) per-kernel-row width-folded weights
    # b_ref  : (1, W*Cout)         folded bias, pre-broadcast over width
    # o_ref  : (1, TH, W*Cout)     lane-dense output row-tile
    TH, WC = o_ref.shape[1], o_ref.shape[2]
    h0 = pl.multiple_of(pl.program_id(1) * TH, TH)

    x_sample = xr_ref.at[0]                      # (Hp, Wp*Cin) ref view, no load
    acc = jnp.zeros((TH, WC), jnp.float32)
    for kh in range(7):                          # 7 fat matmuls, K = Wp*Cin
        rows = x_sample[pl.ds(h0 + kh, TH), :]   # (TH, Wp*Cin) sublane-shifted rows
        acc = acc + jnp.dot(rows, w_ref[kh],
                            preferred_element_type=jnp.float32)

    o_ref[0] = jnp.maximum(acc + b_ref[...], 0.0).astype(o_ref.dtype)


def _fold_params(params, in_channels, out_channels):
    """Fold conv1x1 + conv3x3 + conv5x5 + conv7x7 into one centered 7x7 conv."""
    wf = jnp.zeros((7, 7, in_channels, out_channels), jnp.float32)
    bf = jnp.zeros((out_channels,), jnp.float32)
    for (w_oihw, b), K in zip(params, (1, 3, 5, 7)):
        off = (7 - K) // 2
        w_hwio = jnp.transpose(w_oihw, (2, 3, 1, 0))   # OIHW -> HWIO
        wf = wf.at[off:off + K, off:off + K].add(w_hwio)
        bf = bf + b
    return wf, bf


def _fold_width(wf_hwio, W):
    """Fold the kw taps + output-width structure into per-kh matmul weights.

    Returns wrow of shape (7, Wp*Cin, W*Cout) with
      wrow[kh, wp*Cin+ci, w*Cout+c] = wf[kh, wp-w, ci, c] if 0 <= wp-w < 7 else 0
    """
    _, _, Cin, Cout = wf_hwio.shape
    Wp = W + 6
    kw = jnp.arange(Wp)[:, None] - jnp.arange(W)[None, :]          # (Wp, W)
    valid = (kw >= 0) & (kw < 7)
    big = wf_hwio[:, jnp.clip(kw, 0, 6)]                            # (7,Wp,W,Cin,Cout)
    big = jnp.where(valid[None, :, :, None, None], big, 0.0)
    return jnp.transpose(big, (0, 1, 3, 2, 4)).reshape(7, Wp * Cin, W * Cout)


def hybrid_feature_fusion(x_nchw, params, *, row_tile=8, use_bf16=False):
    """x_nchw: (N, Cin, H, W) float32 -> (N, Cout, H, W), matching
    HybridFeatureFusionLayer.forward."""
    N, Cin, H, W = x_nchw.shape
    Cout = params[0][0].shape[0]
    Hp, Wp = H + 6, W + 6
    WC = W * Cout

    # Trace-time weight preparation (tiny; exact folding).
    wf, bf = _fold_params(params, Cin, Cout)
    wrow = _fold_width(wf, W)                        # (7, Wp*Cin, W*Cout)
    brow = jnp.tile(bf, W).reshape(1, WC)            # (1, W*Cout)

    # NCHW -> NHWC -> pad by 3 -> fuse (Wp, Cin) into a lane-dense last dim.
    x = jnp.transpose(x_nchw, (0, 2, 3, 1))
    xp = jnp.pad(x, ((0, 0), (3, 3), (3, 3), (0, 0))).reshape(N, Hp, Wp * Cin)

    if use_bf16:   # optional v6e/v7x matmul speedup; accumulation stays f32
        xp = xp.astype(jnp.bfloat16)
        wrow = wrow.astype(jnp.bfloat16)

    # Row tiling: TH rows of output per grid step (needs TH % 8 == 0 or TH == H).
    TH = row_tile if (H % row_tile == 0) else H
    n_h = H // TH
    grid = (N, n_h)

    # VMEM budget from the actual per-step footprint (double-buffered), capped
    # well under v7x's 64 MiB.
    itemsize = xp.dtype.itemsize
    footprint = 2 * (Hp * Wp * Cin * itemsize          # input sample block
                     + wrow.size * wrow.dtype.itemsize  # folded weights
                     + brow.size * 4                    # bias
                     + TH * WC * 4)                     # output tile
    vmem_bytes = int(min(max(2 * footprint, 4 * 1024 * 1024), 48 * 1024 * 1024))

    out = pl.pallas_call(
        _fusion_kernel,
        out_shape=jax.ShapeDtypeStruct((N, H, WC), jnp.float32),
        grid=grid,
        in_specs=[
            pl.BlockSpec((1, Hp, Wp * Cin), lambda n, h: (n, 0, 0)),
            pl.BlockSpec((7, Wp * Cin, WC), lambda n, h: (0, 0, 0)),
            pl.BlockSpec((1, WC), lambda n, h: (0, 0)),
        ],
        out_specs=pl.BlockSpec((1, TH, WC), lambda n, h: (n, h, 0)),
        compiler_params=pltpu.CompilerParams(
            dimension_semantics=("parallel", "parallel"),
            vmem_limit_bytes=vmem_bytes),
    )(xp, wrow, brow)

    # Lane-dense slab -> NHWC -> NCHW (wrapper-side layout plumbing).
    return jnp.transpose(out.reshape(N, H, W, Cout), (0, 3, 1, 2))


def init_params(key, in_channels, out_channels):
    """Deterministic synthetic weights with PyTorch Conv2d shapes/init."""
    ks = jax.random.split(key, 8)
    params = []
    for i, K in enumerate((1, 3, 5, 7)):
        fan_in = in_channels * K * K
        scale = 1.0 / jnp.sqrt(fan_in)
        w = jax.random.uniform(ks[2 * i], (out_channels, in_channels, K, K),
                               minval=-scale, maxval=scale, dtype=jnp.float32)
        b = jax.random.uniform(ks[2 * i + 1], (out_channels,),
                               minval=-scale, maxval=scale, dtype=jnp.float32)
        params.append((w, b))
    return tuple(params)


def _reference(x_nchw, params):
    """Pure-JAX reference using the UNfolded per-conv weights (also validates
    the trace-time weight/width folding)."""
    outs = []
    for (w_oihw, b), K in zip(params, (1, 3, 5, 7)):
        pad = (K - 1) // 2
        y = jax.lax.conv_general_dilated(
            x_nchw, w_oihw, window_strides=(1, 1),
            padding=[(pad, pad), (pad, pad)],
            dimension_numbers=("NCHW", "OIHW", "NCHW"))
        outs.append(y + b[None, :, None, None])
    return jnp.maximum(outs[0] + outs[1] + outs[2] + outs[3], 0.0)


if __name__ == "__main__":
    key = jax.random.PRNGKey(0)
    k_x, k_p = jax.random.split(key)

    N, Cin, Cout, H, W = 2, 4, 8, 16, 16
    x = jax.random.normal(k_x, (N, Cin, H, W), dtype=jnp.float32)
    params = init_params(k_p, Cin, Cout)

    out = jax.block_until_ready(hybrid_feature_fusion(x, params))
    ref = _reference(x, params)

    assert out.shape == (N, Cout, H, W)
    assert jnp.allclose(out, ref, atol=1e-4, rtol=1e-4), "mismatch vs reference"

    print("KERNEL_OK")
</pallas_src>

<mosaic_0001>
module attributes {stable_mosaic.version = 11 : i64} {
  func.func @_fusion_kernel(%arg0: i32, %arg1: i32, %arg2: memref<1x22x88xf32, #tpu.memory_space<vmem>>, %arg3: memref<7x88x128xf32, #tpu.memory_space<vmem>>, %arg4: memref<1x128xf32, #tpu.memory_space<vmem>>, %arg5: memref<1x8x128xf32, #tpu.memory_space<vmem>>) attributes {dimension_semantics = [#tpu.dimension_semantics<parallel>, #tpu.dimension_semantics<parallel>], iteration_bounds = array<i64: 2, 2>, scalar_prefetch = 0 : i64, scratch_operands = 0 : i64, tpu.core_type = #tpu.core_type<tc>, window_params = [{transform_indices = @transform_0, window_bounds = array<i64: 1, 22, 88>}, {pipeline_mode = #tpu.pipeline_mode<synchronous>, transform_indices = @transform_1, window_bounds = array<i64: 7, 88, 128>}, {pipeline_mode = #tpu.pipeline_mode<synchronous>, transform_indices = @transform_2, window_bounds = array<i64: 1, 128>}, {transform_indices = @transform_3, window_bounds = array<i64: 1, 8, 128>}]} {
    %c8_i32 = arith.constant 8 : i32
    %0 = arith.muli %arg1, %c8_i32 : i32
    %1 = tpu.assume_multiple %0, 8 : i32
    %cst = arith.constant 0.000000e+00 : f32
    %2 = vector.broadcast %cst : f32 to vector<8x128xf32>
    %c0_i32 = arith.constant 0 : i32
    %3 = arith.addi %1, %c0_i32 : i32
    %c0_i32_0 = arith.constant 0 : i32
    %c0_i32_1 = arith.constant 0 : i32
    %c0_i32_2 = arith.constant 0 : i32
    %4 = tpu.memref_slice %arg2[%c0_i32_0, %c0_i32_1, %c0_i32_2] : memref<1x22x88xf32, #tpu.memory_space<vmem>> -> memref<1x22x88xf32, #tpu.memory_space<vmem>>
    %5 = tpu.memref_squeeze %4 : memref<1x22x88xf32, #tpu.memory_space<vmem>> -> memref<22x88xf32, #tpu.memory_space<vmem>>
    %6 = arith.index_cast %3 : i32 to index
    %c0 = arith.constant 0 : index
    %7 = vector.load %5[%6, %c0] : memref<22x88xf32, #tpu.memory_space<vmem>>, vector<8x88xf32>
    %c0_3 = arith.constant 0 : index
    %c0_4 = arith.constant 0 : index
    %c0_5 = arith.constant 0 : index
    %8 = vector.load %arg3[%c0_3, %c0_4, %c0_5] : memref<7x88x128xf32, #tpu.memory_space<vmem>>, vector<1x88x128xf32>
    %9 = vector.shape_cast %8 : vector<1x88x128xf32> to vector<88x128xf32>
    %cst_6 = arith.constant dense<0.000000e+00> : vector<8x128xf32>
    %10 = tpu.matmul %7, %9, %cst_6 {dimension_numbers = #tpu.dot_dimension_numbers<[1], [0], [0], [1], [0, 0, 1, 1], [], []>} : vector<8x88xf32>, vector<88x128xf32>, vector<8x128xf32> -> vector<8x128xf32>
    %11 = arith.addf %2, %10 : vector<8x128xf32>
    %c1_i32 = arith.constant 1 : i32
    %12 = arith.addi %1, %c1_i32 : i32
    %c0_i32_7 = arith.constant 0 : i32
    %c0_i32_8 = arith.constant 0 : i32
    %c0_i32_9 = arith.constant 0 : i32
    %13 = tpu.memref_slice %arg2[%c0_i32_7, %c0_i32_8, %c0_i32_9] : memref<1x22x88xf32, #tpu.memory_space<vmem>> -> memref<1x22x88xf32, #tpu.memory_space<vmem>>
    %14 = tpu.memref_squeeze %13 : memref<1x22x88xf32, #tpu.memory_space<vmem>> -> memref<22x88xf32, #tpu.memory_space<vmem>>
    %15 = arith.index_cast %12 : i32 to index
    %c0_10 = arith.constant 0 : index
    %16 = vector.load %14[%15, %c0_10] : memref<22x88xf32, #tpu.memory_space<vmem>>, vector<8x88xf32>
    %c1 = arith.constant 1 : index
    %c0_11 = arith.constant 0 : index
    %c0_12 = arith.constant 0 : index
    %17 = vector.load %arg3[%c1, %c0_11, %c0_12] : memref<7x88x128xf32, #tpu.memory_space<vmem>>, vector<1x88x128xf32>
    %18 = vector.shape_cast %17 : vector<1x88x128xf32> to vector<88x128xf32>
    %cst_13 = arith.constant dense<0.000000e+00> : vector<8x128xf32>
    %19 = tpu.matmul %16, %18, %cst_13 {dimension_numbers = #tpu.dot_dimension_numbers<[1], [0], [0], [1], [0, 0, 1, 1], [], []>} : vector<8x88xf32>, vector<88x128xf32>, vector<8x128xf32> -> vector<8x128xf32>
    %20 = arith.addf %11, %19 : vector<8x128xf32>
    %c2_i32 = arith.constant 2 : i32
    %21 = arith.addi %1, %c2_i32 : i32
    %c0_i32_14 = arith.constant 0 : i32
    %c0_i32_15 = arith.constant 0 : i32
    %c0_i32_16 = arith.constant 0 : i32
    %22 = tpu.memref_slice %arg2[%c0_i32_14, %c0_i32_15, %c0_i32_16] : memref<1x22x88xf32, #tpu.memory_space<vmem>> -> memref<1x22x88xf32, #tpu.memory_space<vmem>>
    %23 = tpu.memref_squeeze %22 : memref<1x22x88xf32, #tpu.memory_space<vmem>> -> memref<22x88xf32, #tpu.memory_space<vmem>>
    %24 = arith.index_cast %21 : i32 to index
    %c0_17 = arith.constant 0 : index
    %25 = vector.load %23[%24, %c0_17] : memref<22x88xf32, #tpu.memory_space<vmem>>, vector<8x88xf32>
    %c2 = arith.constant 2 : index
    %c0_18 = arith.constant 0 : index
    %c0_19 = arith.constant 0 : index
    %26 = vector.load %arg3[%c2, %c0_18, %c0_19] : memref<7x88x128xf32, #tpu.memory_space<vmem>>, vector<1x88x128xf32>
    %27 = vector.shape_cast %26 : vector<1x88x128xf32> to vector<88x128xf32>
    %cst_20 = arith.constant dense<0.000000e+00> : vector<8x128xf32>
    %28 = tpu.matmul %25, %27, %cst_20 {dimension_numbers = #tpu.dot_dimension_numbers<[1], [0], [0], [1], [0, 0, 1, 1], [], []>} : vector<8x88xf32>, vector<88x128xf32>, vector<8x128xf32> -> vector<8x128xf32>
    %29 = arith.addf %20, %28 : vector<8x128xf32>
    %c3_i32 = arith.constant 3 : i32
    %30 = arith.addi %1, %c3_i32 : i32
    %c0_i32_21 = arith.constant 0 : i32
    %c0_i32_22 = arith.constant 0 : i32
    %c0_i32_23 = arith.constant 0 : i32
    %31 = tpu.memref_slice %arg2[%c0_i32_21, %c0_i32_22, %c0_i32_23] : memref<1x22x88xf32, #tpu.memory_space<vmem>> -> memref<1x22x88xf32, #tpu.memory_space<vmem>>
    %32 = tpu.memref_squeeze %31 : memref<1x22x88xf32, #tpu.memory_space<vmem>> -> memref<22x88xf32, #tpu.memory_space<vmem>>
    %33 = arith.index_cast %30 : i32 to index
    %c0_24 = arith.constant 0 : index
    %34 = vector.load %32[%33, %c0_24] : memref<22x88xf32, #tpu.memory_space<vmem>>, vector<8x88xf32>
    %c3 = arith.constant 3 : index
    %c0_25 = arith.constant 0 : index
    %c0_26 = arith.constant 0 : index
    %35 = vector.load %arg3[%c3, %c0_25, %c0_26] : memref<7x88x128xf32, #tpu.memory_space<vmem>>, vector<1x88x128xf32>
    %36 = vector.shape_cast %35 : vector<1x88x128xf32> to vector<88x128xf32>
    %cst_27 = arith.constant dense<0.000000e+00> : vector<8x128xf32>
    %37 = tpu.matmul %34, %36, %cst_27 {dimension_numbers = #tpu.dot_dimension_numbers<[1], [0], [0], [1], [0, 0, 1, 1], [], []>} : vector<8x88xf32>, vector<88x128xf32>, vector<8x128xf32> -> vector<8x128xf32>
    %38 = arith.addf %29, %37 : vector<8x128xf32>
    %c4_i32 = arith.constant 4 : i32
    %39 = arith.addi %1, %c4_i32 : i32
    %c0_i32_28 = arith.constant 0 : i32
    %c0_i32_29 = arith.constant 0 : i32
    %c0_i32_30 = arith.constant 0 : i32
    %40 = tpu.memref_slice %arg2[%c0_i32_28, %c0_i32_29, %c0_i32_30] : memref<1x22x88xf32, #tpu.memory_space<vmem>> -> memref<1x22x88xf32, #tpu.memory_space<vmem>>
    %41 = tpu.memref_squeeze %40 : memref<1x22x88xf32, #tpu.memory_space<vmem>> -> memref<22x88xf32, #tpu.memory_space<vmem>>
    %42 = arith.index_cast %39 : i32 to index
    %c0_31 = arith.constant 0 : index
    %43 = vector.load %41[%42, %c0_31] : memref<22x88xf32, #tpu.memory_space<vmem>>, vector<8x88xf32>
    %c4 = arith.constant 4 : index
    %c0_32 = arith.constant 0 : index
    %c0_33 = arith.constant 0 : index
    %44 = vector.load %arg3[%c4, %c0_32, %c0_33] : memref<7x88x128xf32, #tpu.memory_space<vmem>>, vector<1x88x128xf32>
    %45 = vector.shape_cast %44 : vector<1x88x128xf32> to vector<88x128xf32>
    %cst_34 = arith.constant dense<0.000000e+00> : vector<8x128xf32>
    %46 = tpu.matmul %43, %45, %cst_34 {dimension_numbers = #tpu.dot_dimension_numbers<[1], [0], [0], [1], [0, 0, 1, 1], [], []>} : vector<8x88xf32>, vector<88x128xf32>, vector<8x128xf32> -> vector<8x128xf32>
    %47 = arith.addf %38, %46 : vector<8x128xf32>
    %c5_i32 = arith.constant 5 : i32
    %48 = arith.addi %1, %c5_i32 : i32
    %c0_i32_35 = arith.constant 0 : i32
    %c0_i32_36 = arith.constant 0 : i32
    %c0_i32_37 = arith.constant 0 : i32
    %49 = tpu.memref_slice %arg2[%c0_i32_35, %c0_i32_36, %c0_i32_37] : memref<1x22x88xf32, #tpu.memory_space<vmem>> -> memref<1x22x88xf32, #tpu.memory_space<vmem>>
    %50 = tpu.memref_squeeze %49 : memref<1x22x88xf32, #tpu.memory_space<vmem>> -> memref<22x88xf32, #tpu.memory_space<vmem>>
    %51 = arith.index_cast %48 : i32 to index
    %c0_38 = arith.constant 0 : index
    %52 = vector.load %50[%51, %c0_38] : memref<22x88xf32, #tpu.memory_space<vmem>>, vector<8x88xf32>
    %c5 = arith.constant 5 : index
    %c0_39 = arith.constant 0 : index
    %c0_40 = arith.constant 0 : index
    %53 = vector.load %arg3[%c5, %c0_39, %c0_40] : memref<7x88x128xf32, #tpu.memory_space<vmem>>, vector<1x88x128xf32>
    %54 = vector.shape_cast %53 : vector<1x88x128xf32> to vector<88x128xf32>
    %cst_41 = arith.constant dense<0.000000e+00> : vector<8x128xf32>
    %55 = tpu.matmul %52, %54, %cst_41 {dimension_numbers = #tpu.dot_dimension_numbers<[1], [0], [0], [1], [0, 0, 1, 1], [], []>} : vector<8x88xf32>, vector<88x128xf32>, vector<8x128xf32> -> vector<8x128xf32>
    %56 = arith.addf %47, %55 : vector<8x128xf32>
    %c6_i32 = arith.constant 6 : i32
    %57 = arith.addi %1, %c6_i32 : i32
    %c0_i32_42 = arith.constant 0 : i32
    %c0_i32_43 = arith.constant 0 : i32
    %c0_i32_44 = arith.constant 0 : i32
    %58 = tpu.memref_slice %arg2[%c0_i32_42, %c0_i32_43, %c0_i32_44] : memref<1x22x88xf32, #tpu.memory_space<vmem>> -> memref<1x22x88xf32, #tpu.memory_space<vmem>>
    %59 = tpu.memref_squeeze %58 : memref<1x22x88xf32, #tpu.memory_space<vmem>> -> memref<22x88xf32, #tpu.memory_space<vmem>>
    %60 = arith.index_cast %57 : i32 to index
    %c0_45 = arith.constant 0 : index
    %61 = vector.load %59[%60, %c0_45] : memref<22x88xf32, #tpu.memory_space<vmem>>, vector<8x88xf32>
    %c6 = arith.constant 6 : index
    %c0_46 = arith.constant 0 : index
    %c0_47 = arith.constant 0 : index
    %62 = vector.load %arg3[%c6, %c0_46, %c0_47] : memref<7x88x128xf32, #tpu.memory_space<vmem>>, vector<1x88x128xf32>
    %63 = vector.shape_cast %62 : vector<1x88x128xf32> to vector<88x128xf32>
    %cst_48 = arith.constant dense<0.000000e+00> : vector<8x128xf32>
    %64 = tpu.matmul %61, %63, %cst_48 {dimension_numbers = #tpu.dot_dimension_numbers<[1], [0], [0], [1], [0, 0, 1, 1], [], []>} : vector<8x88xf32>, vector<88x128xf32>, vector<8x128xf32> -> vector<8x128xf32>
    %65 = arith.addf %56, %64 : vector<8x128xf32>
    %c0_49 = arith.constant 0 : index
    %c0_50 = arith.constant 0 : index
    %66 = vector.load %arg4[%c0_49, %c0_50] : memref<1x128xf32, #tpu.memory_space<vmem>>, vector<1x128xf32>
    %67 = vector.broadcast %66 : vector<1x128xf32> to vector<8x128xf32>
    %68 = arith.addf %65, %67 : vector<8x128xf32>
    %cst_51 = arith.constant 0.000000e+00 : f32
    %69 = vector.broadcast %cst_51 : f32 to vector<8x128xf32>
    %70 = arith.maximumf %68, %69 : vector<8x128xf32>
    %c0_52 = arith.constant 0 : index
    %c0_53 = arith.constant 0 : index
    %c0_54 = arith.constant 0 : index
    %71 = vector.load %arg5[%c0_52, %c0_53, %c0_54] : memref<1x8x128xf32, #tpu.memory_space<vmem>>, vector<1x8x128xf32>
    %72 = vector.shape_cast %71 : vector<1x8x128xf32> to vector<8x128xf32>
    %73 = vector.shape_cast %70 : vector<8x128xf32> to vector<1x8x128xf32>
    tpu.vector_store %arg5[%c0_52, %c0_53, %c0_54], %73 {strides = array<i32>} : memref<1x8x128xf32, #tpu.memory_space<vmem>>, vector<1x8x128xf32>,
    return
  }
  func.func @transform_0(%arg0: i32, %arg1: i32) -> (i32, i32, i32) {
    %c0_i32 = arith.constant 0 : i32
    %c0_i32_0 = arith.constant 0 : i32
    %c0_i32_1 = arith.constant 0 : i32
    return %arg0, %c0_i32, %c0_i32_0 : i32, i32, i32
  }
  func.func @transform_1(%arg0: i32, %arg1: i32) -> (i32, i32, i32) {
    %c0_i32 = arith.constant 0 : i32
    %c0_i32_0 = arith.constant 0 : i32
    %c0_i32_1 = arith.constant 0 : i32
    %c0_i32_2 = arith.constant 0 : i32
    return %c0_i32, %c0_i32_0, %c0_i32_1 : i32, i32, i32
  }
  func.func @transform_2(%arg0: i32, %arg1: i32) -> (i32, i32) {
    %c0_i32 = arith.constant 0 : i32
    %c0_i32_0 = arith.constant 0 : i32
    %c0_i32_1 = arith.constant 0 : i32
    return %c0_i32, %c0_i32_0 : i32, i32
  }
  func.func @transform_3(%arg0: i32, %arg1: i32) -> (i32, i32, i32) {
    %c0_i32 = arith.constant 0 : i32
    %c0_i32_0 = arith.constant 0 : i32
    return %arg0, %arg1, %c0_i32 : i32, i32, i32
  }
}

</mosaic_0001>

<bundles_post_ra>
// kernel: tpu_custom_call.1
= control target key start
LH: loop header
LB: loop body
LE: loop exit
PB: predicated region body
PF: predicated region fallthrough
CT: control target
= control target key end

     0   :  { %8 = vsyncpa [#allocation3], 0  ;;  %s1840_s0 = inlined_call_operand.vmem [shape: f32[2,22,88], index: 0, kind: input, shape index: {}]   ;;  %s1841_s1 = inlined_call_operand.hbm [shape: f32[7,88,128], index: 1, kind: input, shape index: {}]   ;;  %s1842_s2 = inlined_call_operand.vmem [shape: f32[1,128], index: 2, kind: input, shape index: {}]   ;;  %s1843_s3 = inlined_call_operand.hbm [shape: f32[2,16,128], index: 3, kind: output, shape index: {}]  }
   0x1   :  { %9 = vsyncpa [#allocation4], 0 }
   0x2   :  { %11 = vsyncpa [#allocation4 + $0x1], 0  ;;  %s1591_s12 = smov 0   ;;  %s1593_s13 = smov 0  }
   0x3   :  { %s1595_s14 = smov 0   ;;  %s1597_s15 = smov 0  }
   0x4   :  { %s1599_s16 = smov 0   ;;  %s1601_s17 = smov 0  }
   0x5   :  { %s1603_s18 = smov 0   ;;  %s1605_s19 = smov 0  }
   0x6 LB: > { %s949_s20 = sadd.s32 4294967295, %s1562_s19   ;;  %s950_s21 = sadd.s32 4294967294, %s1562_s19   ;;  %s1562_s19 = sphi %s1605_s19, %s17_s19   ;;  %s1558_s18 = sphi %s1603_s18, %s1863_s18   ;;  %s1554_s17 = sphi %s1601_s17, %s1862_s17   ;;  %s1550_s16 = sphi %s1599_s16, %s1861_s16   ;;  %s1546_s15 = sphi %s1597_s15, %s1860_s15   ;;  %s1542_s14 = sphi %s1595_s14, %s1859_s14   ;;  %s1538_s13 = sphi %s1593_s13, %s1858_s13   ;;  %s1534_s12 = sphi %s1591_s12, %s1857_s12  }
   0x7   : > { %s26_s22 = sadd.s32 1, %s1554_s17  ;;  %s29_s23 = sadd.s32 1, %s1558_s18 }
   0x8   : > { %p27_p0 = scmp.ge.s32.totalorder %s26_s22, 2  ;;  %s106_s24 = sadd.s32 1, %s1542_s14 }
   0x9   : > { %p116_p1 = scmp.ne.s32.totalorder %s1542_s14, %s1538_s13  ;;  %p117_p2 = scmp.eq.s32.totalorder %s949_s20, 3 }
   0xa   : > { %s1865_s22 = smov (%p27_p0, %s26_s22), 0  ;;  %s1867_s23 = smov (!%p27_p0, %s29_s23), %s1558_s18 }
   0xb   : > { %s102_s25 = ssub.s32 %s1554_s17, %s1865_s22  ;;  %p1643_p3 = por %p117_p2, %p116_p1 }
   0xc   : > { %p31_p4 = scmp.ge.s32.totalorder %s1867_s23, 2  ;;  %p122_p5 = scmp.ne.s32.totalorder %s1538_s13, %s1534_s12 }
   0xd   : > { %s1848_s26 = scalar_select %p1643_p3, 1, 0 }
   0xe   : > { %p123_p6 = scmp.eq.s32.totalorder %s950_s21, 3  ;;  %p951_p7 = scmp.ge.s32.totalorder %s1562_s19, 1 }
   0xf   : > { %s1869_s23 = smov (%p31_p4, %s1867_s23), 0  ;;  %p130_p9 = scmp.lt.s32.totalorder %s1562_s19, 5 }
  0x10   : > { %p1652_p8 = por %p123_p6, %p122_p5  ;;  %s101_s28 = ssub.s32 %s1558_s18, %s1869_s23 }
  0x11   : > { %s103_s29 = sor.u32 %s102_s25, %s101_s28  ;;  %p1659_p10 = pnand %p951_p7, %p130_p9 }
  0x12   : > { %s1849_s27 = scalar_select %p1652_p8, 1, 0 }
  0x13   : > { %s1850_s30 = scalar_select %p1659_p10, 1, 0 }
  0x14   : > { %p104_p11 = scmp.eq.s32.totalorder %s103_s29, 0  ;;  %p1663_p12 = scmp.eq.s32.totalorder %s949_s20, 0 }
  0x15   : > { %p1355_p13 = pneg %p1659_p10  ;;  %s1564_s6 = smov [#allocation2]  }
  0x16   : > { %s1851_s4 = scalar_select %p1663_p12, 1, 0 }
  0x17   : > { %s1670_s5 = scalar_select %p104_p11, %s1542_s14, %s106_s24  }
  0x18   : > { %s142_s7 = sshll.u32 %s1564_s6, 4  ;;  %p1674_p0 = pnand %p1663_p12, %p1355_p13  ;;  %s143_s7 = int_to_ptr.vmem [resolvable:$true] %s142_s7 }
  0x19   : > { %s1436_s11 = scalar_lea.hbm %s1841_s1, 9856 }
  0x1a   : > { %p1437_p1 = scmp.ne.s32.totalorder %s1841_s1, %s1436_s11  ;;  %p1438_p2 = pneg %p1674_p0 }
  0x1b   : > { %p1443_p6 = scmp.lt.u32.totalorder %s1436_s11, %s1841_s1 }
  0x1c   : > { %p1439_p4 = pnand %p1438_p2, %p1437_p1 }
  0x1e   : > { %p1440_p5 = pneg %p1439_p4 }
  0x20   : > { %p1445_p7 = pnand %p1443_p6, %p1440_p5 }
  0x22   : > { %1448 = shalt.err (!%p1445_p7)
}
  0x23   : > { %s1449_s28 = scalar_lea.vmem %s143_s7, 9856  ;;  %p1457_p8 = scmp.lt.s32.totalorder %s143_s7, %s143_s7 }
  0x24   : > { %p1450_p9 = scmp.ne.s32.totalorder %s143_s7, %s1449_s28  ;;  %p1458_p3 = scmp.lt.s32.totalorder %s1449_s28, %s1449_s28 }
  0x26   : > { %p1452_p11 = pnand %p1450_p9, %p1438_p2  ;;  %p1459_p12 = por %p1458_p3, %p1457_p8 }
  0x28   : > { %p1453_p13 = pneg %p1452_p11 }
  0x2a   : > { %p1460_p10 = pnand %p1459_p12, %p1453_p13 }
  0x2c   : > { %1463 = shalt.err (!%p1460_p10)
}
  0x2d   : > { %s1565_s29 = smov 128   ;;  %s1566_s6 = smov 8  }
  0x2e   : > { %1358 = dma.hbm_to_vmem [thread:$0]  (!%p1674_p0), %s1841_s1, 9856, %s143_s7, [#allocation3], %s1565_s29, %s1565_s29, %s1566_s6  }
  0x2f   : > { %p1853_p1 = scmp.ne.s32.totalorder %s1850_s30, 0 }
  0x30   : > { %p1854_p4 = scmp.ne.s32.totalorder (!%p1853_p1), %s1851_s4, 0 }
  0x31   : > { %169 = sbr.rel (%p1853_p1) target bundleno = 381 (0x17d), region = 32 }
  0x38   : > { %1525 = dma.done.wait (%p1854_p4), [#allocation3], 9856  }
  0x39   : > { %1527 = vsyncadd (%p1854_p4), [#allocation3], 4294957440  ;;  %v1567_v0 = vmov 0.0|0.0   ;;  %vm1568_vm0 = vmmov 0   ;;  %v1569_v1 = vmov 0.0   ;;  %v216_v2 = vld [vmem:[#allocation2 + $0x58] sm:$0xff] }
  0x3a   : > { %1243 = vmatprep.subr.bf16.mxu0 %v1567_v0  ;;  %1258 = vmatprep.subr.bf16.mxu1 %v1567_v0  ;;  %v217_v3 = vld [vmem:[#allocation2 + $0x60] sm:$0xff]  ;;  %v202_v6 = vld [vmem:[#allocation2 + $0x8] sm:$0xff]  ;;  %v219_v8 = vld [vmem:[#allocation2 + $0x70] sm:$0xff]  ;;  %p193_p3 = scmp.lt.s32.totalorder %s1550_s16, 1  ;;  %s958_s20 = sshll.u32 %s1546_s15, 3  ;;  %vm227_vm1 = vcmask 719872  }
  0x3b   : > { %1090 = vmatprep.mubr.msk.f32.mxu0 %vm1568_vm0, %v1569_v1  ;;  %1115 = vmatprep.mubr.msk.f32.mxu1 %vm1568_vm0, %v1569_v1  ;;  %v201_v4 = vld [vmem:[#allocation2] sm:$0xff]  ;;  %v1244_v5 = vpack.c.bf16 %v217_v3, %v216_v2  ;;  %v218_v7 = vld [vmem:[#allocation2 + $0x68] sm:$0xff]  ;;  %v203_v10 = vld [vmem:[#allocation2 + $0x10] sm:$0xff]  ;;  %s190_s24 = sand.u32 1, %s1538_s13   ;;  %s980_s28 = sshll.u32 %s1550_s16, 1 }
  0x3c   : > { %v1259_v9 = vpack.c.bf16 %v202_v6, %v201_v4  ;;  %v204_v11 = vld [vmem:[#allocation2 + $0x18] sm:$0xff]  ;;  %v1247_v12 = vpack.c.bf16 %v219_v8, %v218_v7  ;;  %v221_v15 = vld [vmem:[#allocation2 + $0x80] sm:$0xff]  ;;  %v206_v17 = vld [vmem:[#allocation2 + $0x28] sm:$0xff]  ;;  %s194_s30 = scalar_select %p193_p3, %s1550_s16, 1 }
  0x3d   : > { %1245 = vmatpush3.bf16.msra.mxu0 %v1244_v5  ;;  %v1262_v13 = vpack.c.bf16 %v204_v11, %v203_v10  ;;  %v220_v14 = vld [vmem:[#allocation2 + $0x78] sm:$0xff]  ;;  %v205_v16 = vld [vmem:[#allocation2 + $0x20] sm:$0xff]  ;;  %v222_v20 = vld [vmem:[#allocation2 + $0x88] sm:$0xff]  ;;  %s956_s25 = sshll.u32 %s190_s24, 3  ;;  %s841_s29 = sadd.s32 %s1546_s15, %s980_s28 }
  0x3e   : > { %1260 = vmatpush3.bf16.msra.mxu1 %v1259_v9  ;;  %1246 = vmatprep.subr.bf16.mxu0 %v1567_v0  ;;  %v1250_v18 = vpack.c.bf16 %v221_v15, %v220_v14  ;;  %v1265_v19 = vpack.c.bf16 %v206_v17, %v205_v16  ;;  %v223_v21 = vld [vmem:[#allocation2 + $0x90] sm:$0xff]  ;;  %v208_v23 = vld [vmem:[#allocation2 + $0x38] sm:$0xff]  ;;  %s1348_s4 = smul.u32 24, %s194_s30  ;;  %v225_v27 = vld [vmem:[#allocation2 + $0xa0] sm:$0xff]  ;;  %s981_s10 = sshll.u32 %s841_s29, 7 }
  0x3f   : > { %1261 = vmatprep.subr.bf16.mxu1 %v1567_v0  ;;  %v207_v22 = vld [vmem:[#allocation2 + $0x30] sm:$0xff]  ;;  %v1253_v24 = vpack.c.bf16 %v223_v21, %v222_v20  ;;  %v224_v26 = vld [vmem:[#allocation2 + $0x98] sm:$0xff]  ;;  %v209_v28 = vld [vmem:[#allocation2 + $0x40] sm:$0xff]  ;;  %s192_s30 = scalar_lea.vmem [#allocation5], %s956_s25  ;;  %s830_s15 = scalar_lea.sflag [#allocation4], %s190_s24 }
  0x40   : > { %v1268_v25 = vpack.c.bf16 %v208_v23, %v207_v22  ;;  %v210_v29 = vld [vmem:[#allocation2 + $0x48] sm:$0xff]  ;;  %v1256_v30 = vpack.c.bf16 %v225_v27, %v224_v26  ;;  %s197_s11 = scalar_lea.vmem %s1840_s0, %s1348_s4  ;;  %v378_v32 = vld [vmem:[#allocation2 + $0xb0] sm:$0xff]  ;;  %v379_v33 = vld [vmem:[#allocation2 + $0xb8] sm:$0xff]  ;;  %s845_s4 = sshll.u32 %s192_s30, 4  ;;  %s1789_s4 = int_to_ptr.vmem [resolvable:$true] %s845_s4 }
  0x41   : > { %1248 = vmatpush3.bf16.msra.mxu0 %v1247_v12  ;;  %v1271_v31 = vpack.c.bf16 %v210_v29, %v209_v28  ;;  %s1720_s21 = scalar_lea.vmem %s197_s11, %s958_s20  ;;  %v226_v34 = vld [vmem:[#allocation2 + $0xa8] sm:$0xff]  ;;  %v468_v36 = vld [vmem:[#allocation2 + $0x110] sm:$0xff]  ;;  %v1274_v40 = vpack.c.bf16 %v379_v33, %v378_v32  ;;  %v380_v42 = vld [vmem:[#allocation2 + $0xc0] sm:$0xff]  ;;  %s1787_s11 = scalar_lea.hbm %s1843_s3, %s981_s10 }
  0x42   : > { %1263 = vmatpush3.bf16.msra.mxu1 %v1262_v13  ;;  %1249 = vmatprep.subr.bf16.mxu0 %v1567_v0  ;;  %v467_v35 = vld [vmem:[#allocation2 + $0x108] sm:$0xff]  ;;  %v960_v37 = vld [vmem:[%s1720_s21 + $0x1] sm:$0xff]  ;;  %v470_v45 = vld [vmem:[#allocation2 + $0x120] sm:$0xff]  ;;  %s1464_s16 = scalar_lea.vmem %s1789_s4, 128  ;;  %p1855_p10 = scmp.ne.s32.totalorder %s1848_s26, 0 }
  0x43   : > { %1264 = vmatprep.subr.bf16.mxu1 %v1567_v0  ;;  %v211_v38 = vld [vmem:[#allocation2 + $0x50] sm:$0xff]  ;;  %v1289_v41 = vpack.c.bf16 %v468_v36, %v467_v35  ;;  %v381_v43 = vld [vmem:[#allocation2 + $0xc8] sm:$0xff]  ;;  %v469_v44 = vld [vmem:[#allocation2 + $0x118] sm:$0xff]  ;;  %p1465_p8 = scmp.ne.s32.totalorder %s1789_s4, %s1464_s16  ;;  %s1570_s20 = smov [#allocation5]  }
  0x44   : > { %v200_v39 = vld [vmem:[%s1720_s21] sm:$0xff]  ;;  %v1277_v46 = vpack.c.bf16 %v381_v43, %v380_v42  ;;  %v1292_v47 = vpack.c.bf16 %v470_v45, %v469_v44  ;;  %v383_v49 = vld [vmem:[#allocation2 + $0xd8] sm:$0xff]  ;;  %v471_v50 = vld [vmem:[#allocation2 + $0x128] sm:$0xff] }
  0x45   : > { %1251 = vmatpush3.bf16.msra.mxu0 %v1250_v18  ;;  %v382_v48 = vld [vmem:[#allocation2 + $0xd0] sm:$0xff]  ;;  %v384_v54 = vld [vmem:[#allocation2 + $0xe0] sm:$0xff]  ;;  %v385_v55 = vld [vmem:[#allocation2 + $0xe8] sm:$0xff]  ;;  %p1466_p12 = pnand %p1465_p8, %p1855_p10 }
  0x46   : > { %1266 = vmatpush3.bf16.msra.mxu1 %v1265_v19  ;;  %1252 = vmatprep.subr.bf16.mxu0 %v1567_v0  ;;  %v472_v51 = vld [vmem:[#allocation2 + $0x130] sm:$0xff]  ;;  %v1280_v52 = vpack.c.bf16 %v383_v49, %v382_v48  ;;  %v473_v56 = vld [vmem:[#allocation2 + $0x138] sm:$0xff]  ;;  %v474_v57 = vld [vmem:[#allocation2 + $0x140] sm:$0xff]  ;;  %v1283_v58 = vpack.c.bf16 %v385_v55, %v384_v54 }
  0x47   : > { %1267 = vmatprep.subr.bf16.mxu1 %v1567_v0  ;;  %v1295_v53 = vpack.c.bf16 %v472_v51, %v471_v50  ;;  %v1298_v59 = vpack.c.bf16 %v474_v57, %v473_v56  ;;  %v386_v60 = vld [vmem:[#allocation2 + $0xf0] sm:$0xff]  ;;  %v387_v61 = vld [vmem:[#allocation2 + $0xf8] sm:$0xff]  ;;  %v475_v62 = vld [vmem:[#allocation2 + $0x148] sm:$0xff]  ;;  %p1467_p0 = pneg %p1466_p12 }
  0x48   : > { %v476_v63 = vld [vmem:[#allocation2 + $0x150] sm:$0xff]  ;;  %v1286_v2 = vpack.c.bf16 %v387_v61, %v386_v60  ;;  %v556_v4 = vld [vmem:[#allocation2 + $0x160] sm:$0xff]  ;;  %v557_v5 = vld [vmem:[#allocation2 + $0x168] sm:$0xff] }
  0x49   : > { %1254 = vmatpush3.bf16.msra.mxu0 %v1253_v24  ;;  %v1301_v3 = vpack.c.bf16 %v476_v63, %v475_v62  ;;  %v388_v6 = vld [vmem:[#allocation2 + $0x100] sm:$0xff]  ;;  %v645_v7 = vld [vmem:[#allocation2 + $0x1b8] sm:$0xff]  ;;  %v1304_v10 = vpack.c.bf16 %v557_v5, %v556_v4  ;;  %v558_v12 = vld [vmem:[#allocation2 + $0x170] sm:$0xff] }
  0x4a   : > { %1269 = vmatpush3.bf16.msra.mxu1 %v1268_v25  ;;  %1255 = vmatprep.subr.bf16.mxu0 %v1567_v0  ;;  %v646_v8 = vld [vmem:[#allocation2 + $0x1c0] sm:$0xff]  ;;  %v964_v9 = vld [vmem:[%s1720_s21 + $0x2] sm:$0xff]  ;;  %v647_v16 = vld [vmem:[#allocation2 + $0x1c8] sm:$0xff] }
  0x4b   : > { %1270 = vmatprep.subr.bf16.mxu1 %v1567_v0  ;;  %v477_v11 = vld [vmem:[#allocation2 + $0x158] sm:$0xff]  ;;  %v1319_v15 = vpack.c.bf16 %v646_v8, %v645_v7  ;;  %v648_v17 = vld [vmem:[#allocation2 + $0x1d0] sm:$0xff]  ;;  %v560_v19 = vld [vmem:[#allocation2 + $0x180] sm:$0xff] }
  0x4c   : > { %v559_v13 = vld [vmem:[#allocation2 + $0x178] sm:$0xff]  ;;  %v561_v20 = vld [vmem:[#allocation2 + $0x188] sm:$0xff]  ;;  %v1322_v21 = vpack.c.bf16 %v648_v17, %v647_v16  ;;  %v650_v23 = vld [vmem:[#allocation2 + $0x1e0] sm:$0xff] }
  0x4d   : > { %1257 = vmatpush3.bf16.msra.mxu0 %v1256_v30  ;;  %v967_v14 = vld [vmem:[%s1720_s21 + $0x3] sm:$0xff]  ;;  %v1307_v18 = vpack.c.bf16 %v559_v13, %v558_v12  ;;  %v1310_v24 = vpack.c.bf16 %v561_v20, %v560_v19  ;;  %v651_v28 = vld [vmem:[#allocation2 + $0x1e8] sm:$0xff]  ;;  %v654_v35 = vld [vmem:[#allocation2 + $0x200] sm:$0xff] }
  0x4e   : > { %1272 = vmatpush3.bf16.msra.mxu1 %v1271_v31  ;;  %1088 = vmatprep.subr.mxu0 %v1569_v1  ;;  %v649_v22 = vld [vmem:[#allocation2 + $0x1d8] sm:$0xff]  ;;  %v562_v25 = vld [vmem:[#allocation2 + $0x190] sm:$0xff]  ;;  %v564_v31 = vld [vmem:[#allocation2 + $0x1a0] sm:$0xff] }
  0x4f   : > { %1113 = vmatprep.subr.mxu1 %v1569_v1  ;;  %v563_v26 = vld [vmem:[#allocation2 + $0x198] sm:$0xff]  ;;  %v1325_v27 = vpack.c.bf16 %v650_v23, %v649_v22  ;;  %v652_v29 = vld [vmem:[#allocation2 + $0x1f0] sm:$0xff]  ;;  %v565_v32 = vld [vmem:[#allocation2 + $0x1a8] sm:$0xff] }
  0x50   : > { %v1313_v30 = vpack.c.bf16 %v563_v26, %v562_v25  ;;  %v1328_v33 = vpack.c.bf16 %v652_v29, %v651_v28  ;;  %v1316_v36 = vpack.c.bf16 %v565_v32, %v564_v31  ;;  %v655_v43 = vld [vmem:[#allocation2 + $0x208] sm:$0xff]  ;;  %v736_v44 = vld [vmem:[#allocation2 + $0x220] sm:$0xff]  ;;  %v738_v48 = vld [vmem:[#allocation2 + $0x230] sm:$0xff] }
  0x51   : > { %1089 = vmatpush3.msra.mxu0 %v226_v34  ;;  %v653_v34 = vld [vmem:[#allocation2 + $0x1f8] sm:$0xff]  ;;  %v737_v45 = vld [vmem:[#allocation2 + $0x228] sm:$0xff]  ;;  %v740_v51 = vld [vmem:[#allocation2 + $0x240] sm:$0xff] }
  0x52   : > { %1091 = vmatmul.mubr.msk.f32.vlgmr.msra.gmra.mrb[0].mxu0 %vm227_vm1, %v960_v37  ;;  %1114 = vmatpush3.msra.mxu1 %v211_v38  ;;  %v1331_v37 = vpack.c.bf16 %v654_v35, %v653_v34  ;;  %v734_v38 = vld [vmem:[#allocation2 + $0x210] sm:$0xff]  ;;  %v739_v49 = vld [vmem:[#allocation2 + $0x238] sm:$0xff]  ;;  %v744_v57 = vld [vmem:[#allocation2 + $0x260] sm:$0xff] }
  0x53   : > { %1273 = vmatprep.subr.bf16.mxu0 %v1567_v0  ;;  %1116 = vmatmul.mubr.msk.f32.vlgmr.msra.gmra.mrb[0].mxu1 %vm227_vm1, %v200_v39  ;;  %v735_v39 = vld [vmem:[#allocation2 + $0x218] sm:$0xff]  ;;  %v1340_v50 = vpack.c.bf16 %v739_v49, %v738_v48  ;;  %v742_v54 = vld [vmem:[#allocation2 + $0x250] sm:$0xff] }
  0x54   : > { %1275 = vmatpush3.bf16.msra.mxu0 %v1274_v40  ;;  %1288 = vmatprep.subr.bf16.mxu1 %v1567_v0  ;;  %v566_v40 = vld [vmem:[#allocation2 + $0x1b0] sm:$0xff]  ;;  %v1334_v42 = vpack.c.bf16 %v735_v39, %v734_v38  ;;  %v743_v55 = vld [vmem:[#allocation2 + $0x258] sm:$0xff] }
  0x55   : > { %1290 = vmatpush3.bf16.msra.mxu1 %v1289_v41  ;;  %1276 = vmatprep.subr.bf16.mxu0 %v1567_v0  ;;  %v970_v41 = vld [vmem:[%s1720_s21 + $0x4] sm:$0xff]  ;;  %v1346_v56 = vpack.c.bf16 %v743_v55, %v742_v54  ;;  %v978_v13 = vld [vmem:[%s1842_s2] ss:$0 sm:$0xff] }
  0x56   : > { %1291 = vmatprep.subr.bf16.mxu1 %v1567_v0  ;;  %1140 = vmatprep.mubr.msk.f32.mxu0 %vm1568_vm0, %v1569_v1 }
  0x57   : > { %1165 = vmatprep.mubr.msk.f32.mxu1 %vm1568_vm0, %v1569_v1 }
  0x58   : > { %1278 = vmatpush3.bf16.msra.mxu0 %v1277_v46  ;;  %v973_v46 = vld [vmem:[%s1720_s21 + $0x5] sm:$0xff] }
  0x59   : > { %1293 = vmatpush3.bf16.msra.mxu1 %v1292_v47  ;;  %1279 = vmatprep.subr.bf16.mxu0 %v1567_v0  ;;  %v1337_v47 = vpack.c.bf16 %v737_v45, %v736_v44 }
  0x5a   : > { %1294 = vmatprep.subr.bf16.mxu1 %v1567_v0 }
  0x5c   : > { %1281 = vmatpush3.bf16.msra.mxu0 %v1280_v52  ;;  %v741_v52 = vld [vmem:[#allocation2 + $0x248] sm:$0xff] }
  0x5d   : > { %1296 = vmatpush3.bf16.msra.mxu1 %v1295_v53  ;;  %1282 = vmatprep.subr.bf16.mxu0 %v1567_v0  ;;  %v1343_v53 = vpack.c.bf16 %v741_v52, %v740_v51 }
  0x5e   : > { %1297 = vmatprep.subr.bf16.mxu1 %v1567_v0 }
  0x60   : > { %1284 = vmatpush3.bf16.msra.mxu0 %v1283_v58  ;;  %v976_v58 = vld [vmem:[%s1720_s21 + $0x6] sm:$0xff]  ;;  %s1468_s21 = sshll.u32 %s1570_s20, 4  ;;  %s1469_s21 = int_to_ptr.vmem [resolvable:$false] %s1468_s21 }
  0x61   : > { %1299 = vmatpush3.bf16.msra.mxu1 %v1298_v59  ;;  %1285 = vmatprep.subr.bf16.mxu0 %v1567_v0  ;;  %s1470_s25 = scalar_lea.vmem %s1469_s21, 256  ;;  %p1471_p2 = scmp.lt.s32.totalorder %s1789_s4, %s1469_s21 }
  0x62   : > { %1300 = vmatprep.subr.bf16.mxu1 %v1567_v0  ;;  %p1472_p5 = scmp.lt.s32.totalorder %s1470_s25, %s1464_s16 }
  0x64   : > { %1287 = vmatpush3.bf16.msra.mxu0 %v1286_v2  ;;  %p1473_p6 = por %p1472_p5, %p1471_p2 }
  0x65   : > { %1302 = vmatpush3.bf16.msra.mxu1 %v1301_v3  ;;  %1138 = vmatprep.subr.mxu0 %v1569_v1 }
  0x66   : > { %1163 = vmatprep.subr.mxu1 %v1569_v1  ;;  %p1474_p7 = pnand %p1473_p6, %p1467_p0 }
  0x68   : > { %1139 = vmatpush3.msra.mxu0 %v388_v6 }
  0x69   : > { %1141 = vmatmul.mubr.msk.f32.vlgmr.msra.gmra.mrb[2].mxu0 %vm227_vm1, %v964_v9  ;;  %1303 = vmatprep.subr.bf16.mxu0 %v1567_v0 }
  0x6a   : > { %1164 = vmatpush3.msra.mxu1 %v477_v11  ;;  %1305 = vmatpush3.bf16.msra.mxu0 %v1304_v10 }
  0x6b   : > { %1166 = vmatmul.mubr.msk.f32.vlgmr.msra.gmra.mrb[2].mxu1 %vm227_vm1, %v967_v14  ;;  %1318 = vmatprep.subr.bf16.mxu1 %v1567_v0 }
  0x6c   : > { %1320 = vmatpush3.bf16.msra.mxu1 %v1319_v15  ;;  %1306 = vmatprep.subr.bf16.mxu0 %v1567_v0 }
  0x6d   : > { %1321 = vmatprep.subr.bf16.mxu1 %v1567_v0  ;;  %1190 = vmatprep.mubr.msk.f32.mxu0 %vm1568_vm0, %v1569_v1 }
  0x6e   : > { %1308 = vmatpush3.bf16.msra.mxu0 %v1307_v18  ;;  %1215 = vmatprep.mubr.msk.f32.mxu1 %vm1568_vm0, %v1569_v1 }
  0x6f   : > { %1309 = vmatprep.subr.bf16.mxu0 %v1567_v0 }
  0x70   : > { %1323 = vmatpush3.bf16.msra.mxu1 %v1322_v21 }
  0x71   : > { %1324 = vmatprep.subr.bf16.mxu1 %v1567_v0 }
  0x72   : > { %1311 = vmatpush3.bf16.msra.mxu0 %v1310_v24 }
  0x73   : > { %1312 = vmatprep.subr.bf16.mxu0 %v1567_v0 }
  0x74   : > { %1326 = vmatpush3.bf16.msra.mxu1 %v1325_v27 }
  0x75   : > { %1327 = vmatprep.subr.bf16.mxu1 %v1567_v0 }
  0x76   : > { %1314 = vmatpush3.bf16.msra.mxu0 %v1313_v30 }
  0x77   : > { %1315 = vmatprep.subr.bf16.mxu0 %v1567_v0 }
  0x78   : > { %1329 = vmatpush3.bf16.msra.mxu1 %v1328_v33 }
  0x79   : > { %1330 = vmatprep.subr.bf16.mxu1 %v1567_v0 }
  0x7a   : > { %1317 = vmatpush3.bf16.msra.mxu0 %v1316_v36 }
  0x7b   : > { %1188 = vmatprep.subr.mxu0 %v1569_v1 }
  0x7c   : > { %1332 = vmatpush3.bf16.msra.mxu1 %v1331_v37 }
  0x7d   : > { %1213 = vmatprep.subr.mxu1 %v1569_v1 }
  0x7e   : > { %1189 = vmatpush3.msra.mxu0 %v566_v40 }
  0x7f   : > { %1191 = vmatmul.mubr.msk.f32.vlgmr.msra.gmra.mrb[4].mxu0 %vm227_vm1, %v970_v41  ;;  %1333 = vmatprep.subr.bf16.mxu0 %v1567_v0 }
  0x80   : > { %1214 = vmatpush3.msra.mxu1 %v655_v43  ;;  %1335 = vmatpush3.bf16.msra.mxu0 %v1334_v42 }
  0x81   : > { %1216 = vmatmul.mubr.msk.f32.vlgmr.msra.gmra.mrb[4].mxu1 %vm227_vm1, %v973_v46  ;;  %1336 = vmatprep.subr.bf16.mxu0 %v1567_v0 }
  0x82   : > { %1240 = vmatprep.mubr.msk.f32.mxu0 %vm1568_vm0, %v1569_v1 }
  0x84   : > { %1338 = vmatpush3.bf16.msra.mxu0 %v1337_v47 }
  0x85   : > { %1339 = vmatprep.subr.bf16.mxu0 %v1567_v0 }
  0x88   : > { %1341 = vmatpush3.bf16.msra.mxu0 %v1340_v50 }
  0x89   : > { %1342 = vmatprep.subr.bf16.mxu0 %v1567_v0 }
  0x8c   : > { %1344 = vmatpush3.bf16.msra.mxu0 %v1343_v53 }
  0x8d   : > { %1345 = vmatprep.subr.bf16.mxu0 %v1567_v0 }
  0x90   : > { %1347 = vmatpush3.bf16.msra.mxu0 %v1346_v56 }
  0x91   : > { %1238 = vmatprep.subr.mxu0 %v1569_v1 }
  0x94   : > { %1239 = vmatpush3.msra.mxu0 %v744_v57 }
  0x95   : > { %1241 = vmatmul.mubr.msk.f32.vlgmr.msra.gmra.mrb[6].mxu0 %vm227_vm1, %v976_v58 }
 0x125   : > { %v297_v59 = vpop.f32.mrb[0].mxu0 }
 0x126   : > { %v1092_v60 = vpop.f32.mrb[1].mxu0  ;;  %v370_v61 = vpop.f32.mrb[0].mxu1 }
 0x127   : > { %v371_v62 = vadd.f32 %v370_v61, %v297_v59  ;;  %v1117_v63 = vpop.f32.mrb[1].mxu1 }
 0x13c   : > { %v458_v2 = vpop.f32.mrb[2].mxu0 }
 0x13d   : > { %v462_v3 = vadd.f32 %v458_v2, %v371_v62  ;;  %v1142_v4 = vpop.f32.mrb[3].mxu0 }
 0x13e   : > { %v547_v0 = vpop.f32.mrb[2].mxu1 }
 0x13f   : > { %v551_v5 = vadd.f32 %v547_v0, %v462_v3  ;;  %v1167_v6 = vpop.f32.mrb[3].mxu1 }
 0x152   : > { %v636_v1 = vpop.f32.mrb[4].mxu0 }
 0x153   : > { %v640_v7 = vadd.f32 %v636_v1, %v551_v5  ;;  %v1192_v8 = vpop.f32.mrb[5].mxu0 }
 0x154   : > { %v725_v9 = vpop.f32.mrb[4].mxu1 }
 0x155   : > { %v729_v10 = vadd.f32 %v725_v9, %v640_v7  ;;  %v1217_v11 = vpop.f32.mrb[5].mxu1 }
 0x168   : > { %v814_v12 = vpop.f32.mrb[6].mxu0 }
 0x169   : > { %v818_v14 = vadd.f32 %v814_v12, %v729_v10  ;;  %v1242_v15 = vpop.f32.mrb[7].mxu0 }
 0x16b   : > { %v826_v16 = vadd.f32 %v978_v13, %v818_v14 }
 0x16d   : > { %v827_v17 = vmax.f32 %v826_v16, 0.0 }
 0x16f   : > { %828 = vst [vmem:[%s192_s30] sm:$0xff] %v827_v17 }
 0x170   : > { %1477 = shalt.err (!%p1474_p7)
}
 0x171   : > { %s1478_s24 = scalar_lea.hbm %s1787_s11, 128  ;;  %s1482_s6 = scalar_lea.hbm %s1843_s3, 512 }
 0x172   : > { %p1479_p9 = scmp.ne.s32.totalorder %s1787_s11, %s1478_s24  ;;  %p1483_p1 = scmp.lt.u32.totalorder %s1787_s11, %s1843_s3 }
 0x173   : > { %p1484_p4 = scmp.lt.u32.totalorder %s1482_s6, %s1478_s24  ;;  %p1486_p8 = scmp.lt.u32.totalorder %s1478_s24, %s1787_s11 }
 0x174   : > { %p1480_p11 = pnand %p1479_p9, %p1855_p10 }
 0x175   : > { %p1485_p3 = por %p1484_p4, %p1483_p1 }
 0x176   : > { %p1481_p13 = pneg %p1480_p11 }
 0x177   : > { %p1487_p12 = por %p1486_p8, %p1485_p3 }
 0x179   : > { %p1488_p0 = pnand %p1487_p12, %p1481_p13 }
 0x17b   : > { %1491 = shalt.err (!%p1488_p0)
}
 0x17c   : > { %1353 = dma.vmem_to_hbm [thread:$0]  (%p1855_p10), %s1789_s4, 128, %s1787_s11, %s830_s15  }
 0x17d PF: > { %p1365_p2 = scmp.ge.s32.totalorder %s1562_s19, 2  ;;  %s857_s30 = sand.u32 1, %s1534_s12  }
 0x17e   : > { %p1856_p5 = scmp.ne.s32.totalorder %s1849_s27, 0  ;;  %s858_s7 = scalar_lea.sflag [#allocation4], %s857_s30 }
 0x180   : > { %p1360_p6 = pnand %p1365_p2, %p1856_p5 }
 0x182   : > { %1529 = dma.done.wait (!%p1360_p6), %s858_s7, 128  }
 0x183   : > { %1531 = vsyncadd (!%p1360_p6), %s858_s7, 4294967168  ;;  %s17_s19 = sadd.s32 1, %s1562_s19   ;;  %s1857_s12 = smov %s1538_s13 }
 0x184   : > { %p14_p7 = scmp.ge.s32.totalorder %s17_s19, 6   ;;  %s1858_s13 = smov %s1542_s14 }
 0x185   : > { %s1859_s14 = smov %s1670_s5  ;;  %s1860_s15 = smov %s1554_s17 }
 0x186   : > { %s1861_s16 = smov %s1558_s18  ;;  %s1862_s17 = smov %s1865_s22 }
 0x187   : > { %s1863_s18 = smov %s1869_s23  ;;  %16 = sbr.rel (!%p14_p7) target bundleno = 6 (0x6), region = 85 }
 0x18e   :  { %863 = vsyncpa [#allocation3], 1 }
 0x18f   :  { %865 = vsyncpa [#allocation3 + $0x1], 1 }
 0x190   :  { %866 = vsyncpa [#allocation4], 1 }
 0x191   :  { %868 = vsyncpa [#allocation4 + $0x1], 1 }

</bundles_post_ra>
